<compile_context>
chip_gen: v6e
topology: v6e:2x2x1
jax: 0.10.0
libtpu: 0.0.40
codegen_flags: <defaults>
</compile_context>

<pallas_src>
import functools

import numpy as np
import jax
import jax.numpy as jnp
from jax import lax
from jax.experimental import pallas as pl
from jax.experimental.pallas import tpu as pltpu

_EPS = 1e-5          # nn.BatchNorm2d default eps
_NEG_SLOPE = 0.01    # nn.LeakyReLU default negative_slope


def _bilinear_matrix(n_out, n_in):
    """align_corners=True 1-D interpolation matrix of shape (n_out, n_in)."""
    W = np.zeros((n_out, n_in), dtype=np.float32)
    if n_in == 1 or n_out == 1:
        W[:, 0] = 1.0
        return W
    scale = (n_in - 1) / (n_out - 1)
    for i in range(n_out):
        src = i * scale
        lo = min(int(np.floor(src)), n_in - 1)
        hi = min(lo + 1, n_in - 1)
        frac = src - lo
        W[i, lo] += 1.0 - frac
        W[i, hi] += frac
    return W


def _border_masks_np(n, h, w):
    """9 compile-time {0,1} border masks, shape (9, n*h*w), tap order (dy,dx) row-major."""
    hw = h * w
    lane = np.arange(n * hw)
    hh = (lane % hw) // w
    ww = lane % w
    rows = []
    for dy in (-1, 0, 1):
        for dx in (-1, 0, 1):
            ok = (hh + dy >= 0) & (hh + dy < h) & (ww + dx >= 0) & (ww + dx < w)
            rows.append(ok.astype(np.float32))
    return np.stack(rows, axis=0)


def _conv3x3(feat, w_ref, b_ref, masks_ref, img_w, total):
    """3x3 zero-padded 'same' conv in channel-major flat layout over the whole batch.

    feat  : (C, N*H*W)   f32  -- channels on sublanes, batch*spatial dense on lanes.
    w     : (Cout, 9*C)  bf16 -- column index = (ky*3 + kx)*C + c.
    b     : (Cout, 1)    f32.
    masks : (9, N*H*W)   f32 {0,1} border masks (precomputed, one per tap).
    Returns (Cout, N*H*W) f32.

    Each tap is a lane rotation (XLU) + f32 mask multiply (VPU); the 9 taps are
    stacked once, bulk-cast to bf16 and contracted in a single K = 9*C MXU matmul
    with f32 accumulation.  Rolls that wrap across image boundaries only feed lanes
    that the border masks zero out, so the whole batch can share one flat axis.
    """
    taps = []
    t = 0
    for dy in (-1, 0, 1):
        for dx in (-1, 0, 1):
            s = dy * img_w + dx                               # flat source offset
            v = pltpu.roll(feat, (-s) % total, axis=1) if s != 0 else feat
            if not (dy == 0 and dx == 0):
                v = v * masks_ref[t:t + 1, :]                 # f32 border masking
            taps.append(v)
            t += 1
    stack = jnp.concatenate(taps, axis=0).astype(jnp.bfloat16)   # (9*C, N*HW)
    y = jnp.dot(w_ref[...], stack, preferred_element_type=jnp.float32)
    return y + b_ref[...]


def _bn_lrelu(y, g_ref, be_ref):
    """Training-mode BatchNorm (batch stats over all lanes, biased var) + LeakyReLU."""
    mu = jnp.mean(y, axis=1, keepdims=True)
    var = jnp.mean((y - mu) * (y - mu), axis=1, keepdims=True)
    h = (y - mu) * lax.rsqrt(var + _EPS) * g_ref[...] + be_ref[...]
    return jnp.where(h >= 0, h, _NEG_SLOPE * h)


def _fused_kernel(x_ref, cw_ref, u_ref, masks_ref,
                  w1_ref, b1_ref, g1_ref, be1_ref,
                  w2_ref, b2_ref, g2_ref, be2_ref,
                  o_ref, *, img_w, total):
    """Whole UpSampleBN forward for the full batch in one invocation."""
    # Bilinear upsample (align_corners=True): one matmul against the block-diagonal
    # (N*HinWin, N*HoutWout) interpolation matrix -> lane-dense (Cx, N*HW) f32.
    up = jnp.dot(x_ref[...], u_ref[...], preferred_element_type=jnp.float32)

    # torch.cat([up_x, concat_with], dim=1) -> sublane concat in channel-major layout.
    feat = jnp.concatenate([up, cw_ref[...]], axis=0)          # (Cin, N*HW) f32

    y1 = _conv3x3(feat, w1_ref, b1_ref, masks_ref, img_w, total)
    h1 = _bn_lrelu(y1, g1_ref, be1_ref)
    y2 = _conv3x3(h1, w2_ref, b2_ref, masks_ref, img_w, total)
    o_ref[...] = _bn_lrelu(y2, g2_ref, be2_ref)                # lane-dense f32 store


def upsample_bn_forward(x_nchw, concat_nchw, params):
    n, cx, hin, win = x_nchw.shape
    n2, cc, hout, wout = concat_nchw.shape
    assert n2 == n
    cin = cx + cc
    cout = params["w1"].shape[0]
    hw = hout * wout
    total = n * hw

    # Block-diagonal bilinear upsample matrix: kron over batch of kron(Wh^T, Ww^T).
    wh = _bilinear_matrix(hout, hin)                          # (Hout, Hin)
    ww = _bilinear_matrix(wout, win)                          # (Wout, Win)
    u2d = np.kron(wh.T, ww.T)                                 # (Hin*Win, Hout*Wout)
    u_bd = jnp.asarray(np.kron(np.eye(n, dtype=np.float32), u2d), dtype=jnp.bfloat16)

    # Channel-major, batch-on-lanes layout: (C, N * H * W).
    x_in = jnp.transpose(x_nchw.reshape(n, cx, hin * win), (1, 0, 2)) \
              .reshape(cx, n * hin * win).astype(jnp.bfloat16)
    cw_in = jnp.transpose(concat_nchw.reshape(n, cc, hw), (1, 0, 2)) \
               .reshape(cc, total).astype(jnp.float32)

    # torch (Cout, Cin, 3, 3) -> (Cout, 9*Cin), column index (ky*3+kx)*Cin + c.
    w1_mat = jnp.transpose(params["w1"], (0, 2, 3, 1)).reshape(cout, 9 * cin)
    w1_mat = w1_mat.astype(jnp.bfloat16)
    w2_mat = jnp.transpose(params["w2"], (0, 2, 3, 1)).reshape(cout, 9 * cout)
    w2_mat = w2_mat.astype(jnp.bfloat16)

    def vec(v):
        return v.reshape(cout, 1).astype(jnp.float32)

    masks = jnp.asarray(_border_masks_np(n, hout, wout))      # (9, N*HW) f32

    out_flat = pl.pallas_call(
        functools.partial(_fused_kernel, img_w=wout, total=total),
        out_shape=jax.ShapeDtypeStruct((cout, total), jnp.float32),
        compiler_params=pltpu.CompilerParams(vmem_limit_bytes=32 * 1024 * 1024),
    )(x_in, cw_in, u_bd, masks,
      w1_mat, vec(params["b1"]), vec(params["g1"]), vec(params["be1"]),
      w2_mat, vec(params["b2"]), vec(params["g2"]), vec(params["be2"]))

    # (Cout, N*HW) -> (N, Cout, H, W): cheap reshuffle of a tiny activation in XLA.
    return jnp.transpose(out_flat.reshape(cout, n, hout, wout), (1, 0, 2, 3))


def reference_forward(x, cw, params):
    """Pure-JAX f32 reference matching the PyTorch module (training-mode BN)."""
    N, cx, hin, win = x.shape
    _, cc, hout, wout = cw.shape
    wh = jnp.asarray(_bilinear_matrix(hout, hin))
    ww = jnp.asarray(_bilinear_matrix(wout, win))
    up = jnp.einsum('Hh,nchw->ncHw', wh, x)
    up = jnp.einsum('Ww,ncHw->ncHW', ww, up)
    f = jnp.concatenate([up, cw], axis=1)

    def conv(z, w, b):
        y = lax.conv_general_dilated(z, w, (1, 1), ((1, 1), (1, 1)),
                                     dimension_numbers=('NCHW', 'OIHW', 'NCHW'))
        return y + b[None, :, None, None]

    def bn_lrelu(h, g, be):
        mean = h.mean(axis=(0, 2, 3), keepdims=True)
        var = ((h - mean) ** 2).mean(axis=(0, 2, 3), keepdims=True)
        y = (h - mean) / jnp.sqrt(var + _EPS) * g[None, :, None, None] \
            + be[None, :, None, None]
        return jnp.where(y >= 0, y, _NEG_SLOPE * y)

    h = bn_lrelu(conv(f, params["w1"], params["b1"]), params["g1"], params["be1"])
    h = bn_lrelu(conv(h, params["w2"], params["b2"]), params["g2"], params["be2"])
    return h


if __name__ == "__main__":
    key = jax.random.PRNGKey(0)
    N, cx, hin, win = 2, 4, 8, 8        # x: low-res feature map
    cc, hout, wout = 4, 16, 16          # concat_with: skip feature map
    cin = cx + cc                       # skip_input = 8
    cout = 8                            # output_features = 8

    ks = jax.random.split(key, 6)
    x = jax.random.normal(ks[0], (N, cx, hin, win), jnp.float32)
    cw = jax.random.normal(ks[1], (N, cc, hout, wout), jnp.float32)
    params = {
        "w1": jax.random.normal(ks[2], (cout, cin, 3, 3), jnp.float32) * 0.1,
        "b1": jax.random.normal(ks[3], (cout,), jnp.float32) * 0.1,
        "g1": jnp.ones((cout,), jnp.float32),
        "be1": jnp.zeros((cout,), jnp.float32),
        "w2": jax.random.normal(ks[4], (cout, cout, 3, 3), jnp.float32) * 0.1,
        "b2": jax.random.normal(ks[5], (cout,), jnp.float32) * 0.1,
        "g2": jnp.ones((cout,), jnp.float32),
        "be2": jnp.zeros((cout,), jnp.float32),
    }

    out = jax.block_until_ready(upsample_bn_forward(x, cw, params))
    ref = jax.block_until_ready(reference_forward(x, cw, params))

    assert out.shape == (N, cout, hout, wout)
    # MXU inputs (upsample matrix, im2col stacks, conv weights) are bf16, reference
    # is pure f32 -> relaxed tolerance.
    np.testing.assert_allclose(np.asarray(out), np.asarray(ref), rtol=4e-2, atol=4e-2)
    print("KERNEL_OK")
</pallas_src>

<mosaic_0001>
module attributes {stable_mosaic.version = 11 : i64} {
  func.func @_fused_kernel(%arg0: memref<4x128xbf16, #tpu.memory_space<vmem>>, %arg1: memref<4x512xf32, #tpu.memory_space<vmem>>, %arg2: memref<128x512xbf16, #tpu.memory_space<vmem>>, %arg3: memref<9x512xf32, #tpu.memory_space<vmem>>, %arg4: memref<8x72xbf16, #tpu.memory_space<vmem>>, %arg5: memref<8x1xf32, #tpu.memory_space<vmem>>, %arg6: memref<8x1xf32, #tpu.memory_space<vmem>>, %arg7: memref<8x1xf32, #tpu.memory_space<vmem>>, %arg8: memref<8x72xbf16, #tpu.memory_space<vmem>>, %arg9: memref<8x1xf32, #tpu.memory_space<vmem>>, %arg10: memref<8x1xf32, #tpu.memory_space<vmem>>, %arg11: memref<8x1xf32, #tpu.memory_space<vmem>>, %arg12: memref<8x512xf32, #tpu.memory_space<vmem>>) attributes {dimension_semantics = [], scalar_prefetch = 0 : i64, scratch_operands = 0 : i64, tpu.core_type = #tpu.core_type<tc>} {
    %c0 = arith.constant 0 : index
    %c0_0 = arith.constant 0 : index
    %0 = vector.load %arg0[%c0, %c0_0] : memref<4x128xbf16, #tpu.memory_space<vmem>>, vector<4x128xbf16>
    %c0_1 = arith.constant 0 : index
    %c0_2 = arith.constant 0 : index
    %1 = vector.load %arg2[%c0_1, %c0_2] : memref<128x512xbf16, #tpu.memory_space<vmem>>, vector<128x512xbf16>
    %cst = arith.constant dense<0.000000e+00> : vector<4x512xf32>
    %2 = tpu.matmul %0, %1, %cst {dimension_numbers = #tpu.dot_dimension_numbers<[1], [0], [0], [1], [0, 0, 1, 1], [], []>} : vector<4x128xbf16>, vector<128x512xbf16>, vector<4x512xf32> -> vector<4x512xf32>
    %c0_3 = arith.constant 0 : index
    %c0_4 = arith.constant 0 : index
    %3 = vector.load %arg1[%c0_3, %c0_4] : memref<4x512xf32, #tpu.memory_space<vmem>>, vector<4x512xf32>
    %4 = tpu.concatenate %2, %3 in 0 : vector<4x512xf32>, vector<4x512xf32> -> vector<8x512xf32>
    %c17_i32 = arith.constant 17 : i32
    %5 = tpu.dynamic_rotate %4 by %c17_i32 dim 1 : vector<8x512xf32>, i32 -> vector<8x512xf32>
    %c0_5 = arith.constant 0 : index
    %c0_6 = arith.constant 0 : index
    %6 = vector.load %arg3[%c0_5, %c0_6] : memref<9x512xf32, #tpu.memory_space<vmem>>, vector<1x512xf32>
    %7 = vector.broadcast %6 : vector<1x512xf32> to vector<8x512xf32>
    %8 = arith.mulf %5, %7 : vector<8x512xf32>
    %c16_i32 = arith.constant 16 : i32
    %9 = tpu.dynamic_rotate %4 by %c16_i32 dim 1 : vector<8x512xf32>, i32 -> vector<8x512xf32>
    %c1 = arith.constant 1 : index
    %c0_7 = arith.constant 0 : index
    %10 = vector.load %arg3[%c1, %c0_7] : memref<9x512xf32, #tpu.memory_space<vmem>>, vector<1x512xf32>
    %11 = vector.broadcast %10 : vector<1x512xf32> to vector<8x512xf32>
    %12 = arith.mulf %9, %11 : vector<8x512xf32>
    %c15_i32 = arith.constant 15 : i32
    %13 = tpu.dynamic_rotate %4 by %c15_i32 dim 1 : vector<8x512xf32>, i32 -> vector<8x512xf32>
    %c2 = arith.constant 2 : index
    %c0_8 = arith.constant 0 : index
    %14 = vector.load %arg3[%c2, %c0_8] : memref<9x512xf32, #tpu.memory_space<vmem>>, vector<1x512xf32>
    %15 = vector.broadcast %14 : vector<1x512xf32> to vector<8x512xf32>
    %16 = arith.mulf %13, %15 : vector<8x512xf32>
    %c1_i32 = arith.constant 1 : i32
    %17 = tpu.dynamic_rotate %4 by %c1_i32 dim 1 : vector<8x512xf32>, i32 -> vector<8x512xf32>
    %c3 = arith.constant 3 : index
    %c0_9 = arith.constant 0 : index
    %18 = vector.load %arg3[%c3, %c0_9] : memref<9x512xf32, #tpu.memory_space<vmem>>, vector<1x512xf32>
    %19 = vector.broadcast %18 : vector<1x512xf32> to vector<8x512xf32>
    %20 = arith.mulf %17, %19 : vector<8x512xf32>
    %c511_i32 = arith.constant 511 : i32
    %21 = tpu.dynamic_rotate %4 by %c511_i32 dim 1 : vector<8x512xf32>, i32 -> vector<8x512xf32>
    %c5 = arith.constant 5 : index
    %c0_10 = arith.constant 0 : index
    %22 = vector.load %arg3[%c5, %c0_10] : memref<9x512xf32, #tpu.memory_space<vmem>>, vector<1x512xf32>
    %23 = vector.broadcast %22 : vector<1x512xf32> to vector<8x512xf32>
    %24 = arith.mulf %21, %23 : vector<8x512xf32>
    %c497_i32 = arith.constant 497 : i32
    %25 = tpu.dynamic_rotate %4 by %c497_i32 dim 1 : vector<8x512xf32>, i32 -> vector<8x512xf32>
    %c6 = arith.constant 6 : index
    %c0_11 = arith.constant 0 : index
    %26 = vector.load %arg3[%c6, %c0_11] : memref<9x512xf32, #tpu.memory_space<vmem>>, vector<1x512xf32>
    %27 = vector.broadcast %26 : vector<1x512xf32> to vector<8x512xf32>
    %28 = arith.mulf %25, %27 : vector<8x512xf32>
    %c496_i32 = arith.constant 496 : i32
    %29 = tpu.dynamic_rotate %4 by %c496_i32 dim 1 : vector<8x512xf32>, i32 -> vector<8x512xf32>
    %c7 = arith.constant 7 : index
    %c0_12 = arith.constant 0 : index
    %30 = vector.load %arg3[%c7, %c0_12] : memref<9x512xf32, #tpu.memory_space<vmem>>, vector<1x512xf32>
    %31 = vector.broadcast %30 : vector<1x512xf32> to vector<8x512xf32>
    %32 = arith.mulf %29, %31 : vector<8x512xf32>
    %c495_i32 = arith.constant 495 : i32
    %33 = tpu.dynamic_rotate %4 by %c495_i32 dim 1 : vector<8x512xf32>, i32 -> vector<8x512xf32>
    %c8 = arith.constant 8 : index
    %c0_13 = arith.constant 0 : index
    %34 = vector.load %arg3[%c8, %c0_13] : memref<9x512xf32, #tpu.memory_space<vmem>>, vector<1x512xf32>
    %35 = vector.broadcast %34 : vector<1x512xf32> to vector<8x512xf32>
    %36 = arith.mulf %33, %35 : vector<8x512xf32>
    %37 = tpu.concatenate %8, %12, %16, %20, %4, %24, %28, %32, %36 in 0 : vector<8x512xf32>, vector<8x512xf32>, vector<8x512xf32>, vector<8x512xf32>, vector<8x512xf32>, vector<8x512xf32>, vector<8x512xf32>, vector<8x512xf32>, vector<8x512xf32> -> vector<72x512xf32>
    %38 = arith.truncf %37 : vector<72x512xf32> to vector<72x512xbf16>
    %c0_14 = arith.constant 0 : index
    %c0_15 = arith.constant 0 : index
    %39 = vector.load %arg4[%c0_14, %c0_15] : memref<8x72xbf16, #tpu.memory_space<vmem>>, vector<8x72xbf16>
    %cst_16 = arith.constant dense<0.000000e+00> : vector<8x512xf32>
    %40 = tpu.matmul %39, %38, %cst_16 {dimension_numbers = #tpu.dot_dimension_numbers<[1], [0], [0], [1], [0, 0, 1, 1], [], []>} : vector<8x72xbf16>, vector<72x512xbf16>, vector<8x512xf32> -> vector<8x512xf32>
    %c0_17 = arith.constant 0 : index
    %c0_18 = arith.constant 0 : index
    %41 = vector.load %arg5[%c0_17, %c0_18] : memref<8x1xf32, #tpu.memory_space<vmem>>, vector<8x1xf32>
    %42 = vector.broadcast %41 : vector<8x1xf32> to vector<8x512xf32>
    %43 = arith.addf %40, %42 : vector<8x512xf32>
    %cst_19 = arith.constant dense<0.000000e+00> : vector<8xf32>
    %44 = vector.multi_reduction <add>, %43, %cst_19 [1] : vector<8x512xf32> to vector<8xf32>
    %45 = vector.shape_cast %44 : vector<8xf32> to vector<8x1xf32>
    %cst_20 = arith.constant 5.120000e+02 : f32
    %46 = vector.broadcast %cst_20 : f32 to vector<8x1xf32>
    %47 = arith.divf %45, %46 : vector<8x1xf32>
    %48 = vector.broadcast %47 : vector<8x1xf32> to vector<8x512xf32>
    %49 = arith.subf %43, %48 : vector<8x512xf32>
    %50 = vector.broadcast %47 : vector<8x1xf32> to vector<8x512xf32>
    %51 = arith.subf %43, %50 : vector<8x512xf32>
    %52 = arith.mulf %49, %51 : vector<8x512xf32>
    %cst_21 = arith.constant dense<0.000000e+00> : vector<8xf32>
    %53 = vector.multi_reduction <add>, %52, %cst_21 [1] : vector<8x512xf32> to vector<8xf32>
    %54 = vector.shape_cast %53 : vector<8xf32> to vector<8x1xf32>
    %cst_22 = arith.constant 5.120000e+02 : f32
    %55 = vector.broadcast %cst_22 : f32 to vector<8x1xf32>
    %56 = arith.divf %54, %55 : vector<8x1xf32>
    %57 = vector.broadcast %47 : vector<8x1xf32> to vector<8x512xf32>
    %58 = arith.subf %43, %57 : vector<8x512xf32>
    %cst_23 = arith.constant 9.99999974E-6 : f32
    %59 = vector.broadcast %cst_23 : f32 to vector<8x1xf32>
    %60 = arith.addf %56, %59 : vector<8x1xf32>
    %61 = math.rsqrt %60 : vector<8x1xf32>
    %62 = vector.broadcast %61 : vector<8x1xf32> to vector<8x512xf32>
    %63 = arith.mulf %58, %62 : vector<8x512xf32>
    %c0_24 = arith.constant 0 : index
    %c0_25 = arith.constant 0 : index
    %64 = vector.load %arg6[%c0_24, %c0_25] : memref<8x1xf32, #tpu.memory_space<vmem>>, vector<8x1xf32>
    %65 = vector.broadcast %64 : vector<8x1xf32> to vector<8x512xf32>
    %66 = arith.mulf %63, %65 : vector<8x512xf32>
    %c0_26 = arith.constant 0 : index
    %c0_27 = arith.constant 0 : index
    %67 = vector.load %arg7[%c0_26, %c0_27] : memref<8x1xf32, #tpu.memory_space<vmem>>, vector<8x1xf32>
    %68 = vector.broadcast %67 : vector<8x1xf32> to vector<8x512xf32>
    %69 = arith.addf %66, %68 : vector<8x512xf32>
    %cst_28 = arith.constant 0.000000e+00 : f32
    %70 = vector.broadcast %cst_28 : f32 to vector<8x512xf32>
    %71 = arith.cmpf oge, %69, %70 : vector<8x512xf32>
    %cst_29 = arith.constant 0.00999999977 : f32
    %72 = vector.broadcast %cst_29 : f32 to vector<8x512xf32>
    %73 = arith.mulf %72, %69 : vector<8x512xf32>
    %74 = arith.select %71, %69, %73 : vector<8x512xi1>, vector<8x512xf32>
    %c17_i32_30 = arith.constant 17 : i32
    %75 = tpu.dynamic_rotate %74 by %c17_i32_30 dim 1 : vector<8x512xf32>, i32 -> vector<8x512xf32>
    %c0_31 = arith.constant 0 : index
    %c0_32 = arith.constant 0 : index
    %76 = vector.load %arg3[%c0_31, %c0_32] : memref<9x512xf32, #tpu.memory_space<vmem>>, vector<1x512xf32>
    %77 = vector.broadcast %76 : vector<1x512xf32> to vector<8x512xf32>
    %78 = arith.mulf %75, %77 : vector<8x512xf32>
    %c16_i32_33 = arith.constant 16 : i32
    %79 = tpu.dynamic_rotate %74 by %c16_i32_33 dim 1 : vector<8x512xf32>, i32 -> vector<8x512xf32>
    %c1_34 = arith.constant 1 : index
    %c0_35 = arith.constant 0 : index
    %80 = vector.load %arg3[%c1_34, %c0_35] : memref<9x512xf32, #tpu.memory_space<vmem>>, vector<1x512xf32>
    %81 = vector.broadcast %80 : vector<1x512xf32> to vector<8x512xf32>
    %82 = arith.mulf %79, %81 : vector<8x512xf32>
    %c15_i32_36 = arith.constant 15 : i32
    %83 = tpu.dynamic_rotate %74 by %c15_i32_36 dim 1 : vector<8x512xf32>, i32 -> vector<8x512xf32>
    %c2_37 = arith.constant 2 : index
    %c0_38 = arith.constant 0 : index
    %84 = vector.load %arg3[%c2_37, %c0_38] : memref<9x512xf32, #tpu.memory_space<vmem>>, vector<1x512xf32>
    %85 = vector.broadcast %84 : vector<1x512xf32> to vector<8x512xf32>
    %86 = arith.mulf %83, %85 : vector<8x512xf32>
    %c1_i32_39 = arith.constant 1 : i32
    %87 = tpu.dynamic_rotate %74 by %c1_i32_39 dim 1 : vector<8x512xf32>, i32 -> vector<8x512xf32>
    %c3_40 = arith.constant 3 : index
    %c0_41 = arith.constant 0 : index
    %88 = vector.load %arg3[%c3_40, %c0_41] : memref<9x512xf32, #tpu.memory_space<vmem>>, vector<1x512xf32>
    %89 = vector.broadcast %88 : vector<1x512xf32> to vector<8x512xf32>
    %90 = arith.mulf %87, %89 : vector<8x512xf32>
    %c511_i32_42 = arith.constant 511 : i32
    %91 = tpu.dynamic_rotate %74 by %c511_i32_42 dim 1 : vector<8x512xf32>, i32 -> vector<8x512xf32>
    %c5_43 = arith.constant 5 : index
    %c0_44 = arith.constant 0 : index
    %92 = vector.load %arg3[%c5_43, %c0_44] : memref<9x512xf32, #tpu.memory_space<vmem>>, vector<1x512xf32>
    %93 = vector.broadcast %92 : vector<1x512xf32> to vector<8x512xf32>
    %94 = arith.mulf %91, %93 : vector<8x512xf32>
    %c497_i32_45 = arith.constant 497 : i32
    %95 = tpu.dynamic_rotate %74 by %c497_i32_45 dim 1 : vector<8x512xf32>, i32 -> vector<8x512xf32>
    %c6_46 = arith.constant 6 : index
    %c0_47 = arith.constant 0 : index
    %96 = vector.load %arg3[%c6_46, %c0_47] : memref<9x512xf32, #tpu.memory_space<vmem>>, vector<1x512xf32>
    %97 = vector.broadcast %96 : vector<1x512xf32> to vector<8x512xf32>
    %98 = arith.mulf %95, %97 : vector<8x512xf32>
    %c496_i32_48 = arith.constant 496 : i32
    %99 = tpu.dynamic_rotate %74 by %c496_i32_48 dim 1 : vector<8x512xf32>, i32 -> vector<8x512xf32>
    %c7_49 = arith.constant 7 : index
    %c0_50 = arith.constant 0 : index
    %100 = vector.load %arg3[%c7_49, %c0_50] : memref<9x512xf32, #tpu.memory_space<vmem>>, vector<1x512xf32>
    %101 = vector.broadcast %100 : vector<1x512xf32> to vector<8x512xf32>
    %102 = arith.mulf %99, %101 : vector<8x512xf32>
    %c495_i32_51 = arith.constant 495 : i32
    %103 = tpu.dynamic_rotate %74 by %c495_i32_51 dim 1 : vector<8x512xf32>, i32 -> vector<8x512xf32>
    %c8_52 = arith.constant 8 : index
    %c0_53 = arith.constant 0 : index
    %104 = vector.load %arg3[%c8_52, %c0_53] : memref<9x512xf32, #tpu.memory_space<vmem>>, vector<1x512xf32>
    %105 = vector.broadcast %104 : vector<1x512xf32> to vector<8x512xf32>
    %106 = arith.mulf %103, %105 : vector<8x512xf32>
    %107 = tpu.concatenate %78, %82, %86, %90, %74, %94, %98, %102, %106 in 0 : vector<8x512xf32>, vector<8x512xf32>, vector<8x512xf32>, vector<8x512xf32>, vector<8x512xf32>, vector<8x512xf32>, vector<8x512xf32>, vector<8x512xf32>, vector<8x512xf32> -> vector<72x512xf32>
    %108 = arith.truncf %107 : vector<72x512xf32> to vector<72x512xbf16>
    %c0_54 = arith.constant 0 : index
    %c0_55 = arith.constant 0 : index
    %109 = vector.load %arg8[%c0_54, %c0_55] : memref<8x72xbf16, #tpu.memory_space<vmem>>, vector<8x72xbf16>
    %cst_56 = arith.constant dense<0.000000e+00> : vector<8x512xf32>
    %110 = tpu.matmul %109, %108, %cst_56 {dimension_numbers = #tpu.dot_dimension_numbers<[1], [0], [0], [1], [0, 0, 1, 1], [], []>} : vector<8x72xbf16>, vector<72x512xbf16>, vector<8x512xf32> -> vector<8x512xf32>
    %c0_57 = arith.constant 0 : index
    %c0_58 = arith.constant 0 : index
    %111 = vector.load %arg9[%c0_57, %c0_58] : memref<8x1xf32, #tpu.memory_space<vmem>>, vector<8x1xf32>
    %112 = vector.broadcast %111 : vector<8x1xf32> to vector<8x512xf32>
    %113 = arith.addf %110, %112 : vector<8x512xf32>
    %cst_59 = arith.constant dense<0.000000e+00> : vector<8xf32>
    %114 = vector.multi_reduction <add>, %113, %cst_59 [1] : vector<8x512xf32> to vector<8xf32>
    %115 = vector.shape_cast %114 : vector<8xf32> to vector<8x1xf32>
    %cst_60 = arith.constant 5.120000e+02 : f32
    %116 = vector.broadcast %cst_60 : f32 to vector<8x1xf32>
    %117 = arith.divf %115, %116 : vector<8x1xf32>
    %118 = vector.broadcast %117 : vector<8x1xf32> to vector<8x512xf32>
    %119 = arith.subf %113, %118 : vector<8x512xf32>
    %120 = vector.broadcast %117 : vector<8x1xf32> to vector<8x512xf32>
    %121 = arith.subf %113, %120 : vector<8x512xf32>
    %122 = arith.mulf %119, %121 : vector<8x512xf32>
    %cst_61 = arith.constant dense<0.000000e+00> : vector<8xf32>
    %123 = vector.multi_reduction <add>, %122, %cst_61 [1] : vector<8x512xf32> to vector<8xf32>
    %124 = vector.shape_cast %123 : vector<8xf32> to vector<8x1xf32>
    %cst_62 = arith.constant 5.120000e+02 : f32
    %125 = vector.broadcast %cst_62 : f32 to vector<8x1xf32>
    %126 = arith.divf %124, %125 : vector<8x1xf32>
    %127 = vector.broadcast %117 : vector<8x1xf32> to vector<8x512xf32>
    %128 = arith.subf %113, %127 : vector<8x512xf32>
    %cst_63 = arith.constant 9.99999974E-6 : f32
    %129 = vector.broadcast %cst_63 : f32 to vector<8x1xf32>
    %130 = arith.addf %126, %129 : vector<8x1xf32>
    %131 = math.rsqrt %130 : vector<8x1xf32>
    %132 = vector.broadcast %131 : vector<8x1xf32> to vector<8x512xf32>
    %133 = arith.mulf %128, %132 : vector<8x512xf32>
    %c0_64 = arith.constant 0 : index
    %c0_65 = arith.constant 0 : index
    %134 = vector.load %arg10[%c0_64, %c0_65] : memref<8x1xf32, #tpu.memory_space<vmem>>, vector<8x1xf32>
    %135 = vector.broadcast %134 : vector<8x1xf32> to vector<8x512xf32>
    %136 = arith.mulf %133, %135 : vector<8x512xf32>
    %c0_66 = arith.constant 0 : index
    %c0_67 = arith.constant 0 : index
    %137 = vector.load %arg11[%c0_66, %c0_67] : memref<8x1xf32, #tpu.memory_space<vmem>>, vector<8x1xf32>
    %138 = vector.broadcast %137 : vector<8x1xf32> to vector<8x512xf32>
    %139 = arith.addf %136, %138 : vector<8x512xf32>
    %cst_68 = arith.constant 0.000000e+00 : f32
    %140 = vector.broadcast %cst_68 : f32 to vector<8x512xf32>
    %141 = arith.cmpf oge, %139, %140 : vector<8x512xf32>
    %cst_69 = arith.constant 0.00999999977 : f32
    %142 = vector.broadcast %cst_69 : f32 to vector<8x512xf32>
    %143 = arith.mulf %142, %139 : vector<8x512xf32>
    %144 = arith.select %141, %139, %143 : vector<8x512xi1>, vector<8x512xf32>
    %c0_70 = arith.constant 0 : index
    %c0_71 = arith.constant 0 : index
    %145 = vector.load %arg12[%c0_70, %c0_71] : memref<8x512xf32, #tpu.memory_space<vmem>>, vector<8x512xf32>
    tpu.vector_store %arg12[%c0_70, %c0_71], %144 {strides = array<i32>} : memref<8x512xf32, #tpu.memory_space<vmem>>, vector<8x512xf32>,
    return
  }
}

</mosaic_0001>

<bundles_post_ra>
// kernel: tpu_custom_call.1
= control target key start
LH: loop header
LB: loop body
LE: loop exit
PB: predicated region body
PF: predicated region fallthrough
CT: control target
= control target key end

     0   :  { %17 = vsyncpa [#allocation3], 0  ;;  %s2030_s0 = inlined_call_operand.vmem [shape: bf16[4,128], index: 0, kind: input, shape index: {}]   ;;  %s2031_s1 = inlined_call_operand.vmem [shape: f32[4,512], index: 1, kind: input, shape index: {}]   ;;  %s2032_s2 = inlined_call_operand.hbm [shape: bf16[128,512], index: 2, kind: input, shape index: {}]   ;;  %s2033_s3 = inlined_call_operand.hbm [shape: f32[9,512], index: 3, kind: input, shape index: {}]   ;;  %s2034_s4 = inlined_call_operand.vmem [shape: bf16[8,72], index: 4, kind: input, shape index: {}]   ;;  %s2035_s5 = inlined_call_operand.vmem [shape: f32[8,1], index: 5, kind: input, shape index: {}]   ;;  %s2036_s6 = inlined_call_operand.vmem [shape: f32[8,1], index: 6, kind: input, shape index: {}]   ;;  %s2037_s7 = inlined_call_operand.vmem [shape: f32[8,1], index: 7, kind: input, shape index: {}]   ;;  %s2038_s8 = inlined_call_operand.vmem [shape: bf16[8,72], index: 8, kind: input, shape index: {}]   ;;  %s2039_s9 = inlined_call_operand.vmem [shape: f32[8,1], index: 9, kind: input, shape index: {}]   ;;  %s2040_s10 = inlined_call_operand.vmem [shape: f32[8,1], index: 10, kind: input, shape index: {}]   ;;  %s2041_s11 = inlined_call_operand.vmem [shape: f32[8,1], index: 11, kind: input, shape index: {}]   ;;  %s2042_s12 = inlined_call_operand.hbm [shape: f32[8,512], index: 12, kind: output, shape index: {}]  }
   0x1   :  { %18 = vsyncpa [#allocation6], 0 }
   0x2   :  { %19 = vsyncpa [#allocation4], 0  ;;  %s1371_s21 = smov [#allocation2]  }
   0x3   :  { %s29_s22 = sshll.u32 %s1371_s21, 4  ;;  %s30_s22 = int_to_ptr.vmem [resolvable:$true] %s29_s22 }
   0x4   :  { %s1313_s23 = scalar_lea.vmem %s30_s22, 4096  ;;  %p1318_p1 = scmp.lt.s32.totalorder %s30_s22, %s30_s22 }
   0x5   :  { %p1314_p0 = scmp.ne.s32.totalorder %s30_s22, %s1313_s23  ;;  %p1319_p2 = scmp.lt.s32.totalorder %s1313_s23, %s1313_s23 }
   0x7   :  { %p1320_p3 = por %p1319_p2, %p1318_p1 }
   0x9   :  { %p1321_p4 = pnand %p1320_p3, %p1314_p0 }
   0xb   :  { %1324 = shalt.err (!%p1321_p4)
}
   0xc   :  { %s1372_s24 = smov 256   ;;  %s1373_s25 = smov 16  }
   0xd   :  { %35 = dma.hbm_to_vmem [thread:$0]  %s2032_s2, 4096, %s30_s22, [#allocation3], %s1372_s24, %s1372_s24, %s1373_s25  }
   0xe   :  { %s1374_s28 = smov [#allocation5]  }
   0xf   :  { %s41_s29 = sshll.u32 %s1374_s28, 4  ;;  %s42_s29 = int_to_ptr.vmem [resolvable:$true] %s41_s29 }
  0x10   :  { %s1333_s30 = scalar_lea.vmem %s42_s29, 1024  ;;  %p1338_p6 = scmp.lt.s32.totalorder %s42_s29, %s42_s29 }
  0x11   :  { %p1334_p5 = scmp.ne.s32.totalorder %s42_s29, %s1333_s30  ;;  %p1339_p7 = scmp.lt.s32.totalorder %s1333_s30, %s1333_s30 }
  0x13   :  { %p1340_p8 = por %p1339_p7, %p1338_p6 }
  0x15   :  { %p1341_p9 = pnand %p1340_p8, %p1334_p5 }
  0x17   :  { %1344 = shalt.err (!%p1341_p9)
}
  0x18   :  { %s1375_s13 = smov 512   ;;  %s1376_s14 = smov 32  }
  0x19   :  { %47 = dma.hbm_to_vmem [thread:$0]  %s2033_s3, 1024, %s42_s29, [#allocation6], %s1375_s13, %s1375_s13, %s1376_s14  }
  0x1a   :  { %1365 = dma.done.wait [#allocation3], 4096  }
  0x1b   :  { %1366 = vsyncadd [#allocation3], 4294963200 }
  0x1c   :  { %1367 = dma.done.wait [#allocation6], 1024  }
  0x1d   :  { %1368 = vsyncadd [#allocation6], 4294966272  ;;  %v1377_v0 = vmov 0   ;;  %v1251_v1 = vld [vmem:[#allocation2 + $0xe4] ss:$16 sps:$4 sm:$0xff]   ;;  %v347_v35 = vld [vmem:[%s2031_s1 + $0x8] sm:$0xff]  ;;  %v367_v61 = vlaneseq }
  0x1e   :  { %296 = vmatprep.mubr.bf16.mxu0 %v1377_v0  ;;  %337 = vmatprep.mubr.bf16.mxu1 %v1377_v0  ;;  %v1253_v2 = vld [vmem:[#allocation2 + $0xec] ss:$16 sps:$4 sm:$0xff]   ;;  %v1255_v3 = vld [vmem:[#allocation2 + $0xe0] ss:$16 sps:$4 sm:$0xff]   ;;  %v1256_v4 = vld [vmem:[#allocation2 + $0xe8] ss:$16 sps:$4 sm:$0xff]   ;;  %v351_v37 = vcombine.low %v347_v35, %v347_v35 }
  0x1f   :  { %1249 = vset.pattern.permute.xlu0 %v1377_v0  ;;  %1250 = vset.pattern.permute.xlu1 %v1377_v0  ;;  %v1257_v5 = vld [vmem:[#allocation2 + $0xc4] ss:$16 sps:$4 sm:$0xff]   ;;  %v1259_v6 = vld [vmem:[#allocation2 + $0xcc] ss:$16 sps:$4 sm:$0xff]   ;;  %v1261_v7 = vld [vmem:[#allocation2 + $0xc0] ss:$16 sps:$4 sm:$0xff]  }
  0x20   :  { %264 = vmatprep.subr.bf16.mxu0 %v1251_v1  ;;  %305 = vmatprep.subr.bf16.mxu1 %v1253_v2  ;;  %v1262_v8 = vld [vmem:[#allocation2 + $0xc8] ss:$16 sps:$4 sm:$0xff]   ;;  %v1263_v9 = vld [vmem:[#allocation2 + $0xa4] ss:$16 sps:$4 sm:$0xff]   ;;  %v1265_v10 = vld [vmem:[#allocation2 + $0xac] ss:$16 sps:$4 sm:$0xff]  }
  0x21   :  { %265 = vmatpush1.bf16.msra.mxu0 %v1255_v3  ;;  %306 = vmatpush1.bf16.msra.mxu1 %v1256_v4  ;;  %v1267_v11 = vld [vmem:[#allocation2 + $0xa0] ss:$16 sps:$4 sm:$0xff]   ;;  %v1268_v12 = vld [vmem:[#allocation2 + $0xa8] ss:$16 sps:$4 sm:$0xff]   ;;  %v1269_v13 = vld [vmem:[#allocation2 + $0x84] ss:$16 sps:$4 sm:$0xff]  }
  0x22   :  { %266 = vmatprep.subr.bf16.mxu0 %v1257_v5  ;;  %307 = vmatprep.subr.bf16.mxu1 %v1259_v6  ;;  %v1271_v14 = vld [vmem:[#allocation2 + $0x8c] ss:$16 sps:$4 sm:$0xff]   ;;  %v1273_v15 = vld [vmem:[#allocation2 + $0x80] ss:$16 sps:$4 sm:$0xff]   ;;  %v1274_v16 = vld [vmem:[#allocation2 + $0x88] ss:$16 sps:$4 sm:$0xff]  }
  0x23   :  { %v1275_v17 = vld [vmem:[#allocation2 + $0x64] ss:$16 sps:$4 sm:$0xff]   ;;  %v1277_v18 = vld [vmem:[#allocation2 + $0x6c] ss:$16 sps:$4 sm:$0xff]   ;;  %v1279_v19 = vld [vmem:[#allocation2 + $0x60] ss:$16 sps:$4 sm:$0xff]  }
  0x24   :  { %v1280_v20 = vld [vmem:[#allocation2 + $0x68] ss:$16 sps:$4 sm:$0xff]   ;;  %v1281_v21 = vld [vmem:[#allocation2 + $0x44] ss:$16 sps:$4 sm:$0xff]   ;;  %v1283_v22 = vld [vmem:[#allocation2 + $0x4c] ss:$16 sps:$4 sm:$0xff]  }
  0x25   :  { %267 = vmatpush1.bf16.msra.mxu0 %v1261_v7  ;;  %308 = vmatpush1.bf16.msra.mxu1 %v1262_v8  ;;  %v1285_v23 = vld [vmem:[#allocation2 + $0x40] ss:$16 sps:$4 sm:$0xff]   ;;  %v1286_v24 = vld [vmem:[#allocation2 + $0x48] ss:$16 sps:$4 sm:$0xff]   ;;  %v1287_v25 = vld [vmem:[#allocation2 + $0x24] ss:$16 sps:$4 sm:$0xff]  }
  0x26   :  { %268 = vmatprep.subr.bf16.mxu0 %v1263_v9  ;;  %309 = vmatprep.subr.bf16.mxu1 %v1265_v10  ;;  %v1289_v26 = vld [vmem:[#allocation2 + $0x2c] ss:$16 sps:$4 sm:$0xff]   ;;  %v1291_v27 = vld [vmem:[#allocation2 + $0x20] ss:$16 sps:$4 sm:$0xff]   ;;  %v1292_v28 = vld [vmem:[#allocation2 + $0x28] ss:$16 sps:$4 sm:$0xff]  }
  0x27   :  { %v1293_v29 = vld [vmem:[#allocation2 + $0x4] ss:$16 sps:$4 sm:$0xff]   ;;  %v1295_v30 = vld [vmem:[#allocation2 + $0xc] ss:$16 sps:$4 sm:$0xff]   ;;  %v1297_v31 = vld [vmem:[#allocation2] ss:$16 sps:$4 sm:$0xff]  }
  0x28   :  { %v1298_v32 = vld [vmem:[#allocation2 + $0x8] ss:$16 sps:$4 sm:$0xff]   ;;  %v71_v33 = vld [vmem:[%s2030_s0] sm:$0x3]  ;;  %vm354_vm0 = vcmask 1043456   ;;  %s1378_s0 = smov 111  }
  0x29   :  { %269 = vmatpush1.bf16.msra.mxu0 %v1267_v11  ;;  %310 = vmatpush1.bf16.msra.mxu1 %v1268_v12  ;;  %v346_v34 = vld [vmem:[%s2031_s1] sm:$0xff]  ;;  %s1379_s1 = smov 112   ;;  %s1380_s21 = smov 113   ;;  %v377_v1 = vshrl.u32 %v367_v61, 7  ;;  %v1574_v3 = vand.u32 127, %v367_v61  ;;  %vm707_vm9 = vcmask 588800  }
  0x2a   :  { %270 = vmatprep.subr.bf16.mxu0 %v1269_v13  ;;  %311 = vmatprep.subr.bf16.mxu1 %v1271_v14  ;;  %v350_v36 = vcombine.low %v346_v34, %v346_v34  ;;  %s1381_s22 = smov 127   ;;  %s1382_s23 = smov 15   ;;  %v701_v50 = vld [vmem:[%s2035_s5] sm:$0xff] }
  0x2b   :  { %s1383_s24 = smov 1   ;;  %s1384_s26 = smov 17   ;;  %v1576_v4 = vsub.s32 0, %v377_v1  ;;  %v1578_v5 = vsub.s32 1, %v377_v1  ;;  %v1580_v9 = vsub.s32 2, %v377_v1  ;;  %v1582_v10 = vsub.s32 3, %v377_v1 }
  0x2c   :  { %v574_v6 = vld [vmem:[#allocation5 + $0x6] ss:$8 sm:$0xf]  ;;  %v614_v8 = vld [vmem:[#allocation5 + $0x7] ss:$8 sm:$0xf] }
  0x2d   :  { %271 = vmatpush1.bf16.msra.mxu0 %v1273_v15  ;;  %312 = vmatpush1.bf16.msra.mxu1 %v1274_v16  ;;  %v654_v11 = vld [vmem:[#allocation5 + $0x20] ss:$8 sm:$0xf]  ;;  %vm568_vm1 = vcmp.lt.s32.totalorder %v1574_v3, 113  ;;  %v1586_v12 = vrot.slane %v574_v6, %v1576_v4  ;;  %v1589_v13 = vrot.slane %v574_v6, %v1578_v5  ;;  %vm608_vm2 = vcmp.lt.s32.totalorder %v1574_v3, 112 }
  0x2e   :  { %272 = vmatprep.subr.bf16.mxu0 %v1275_v17  ;;  %313 = vmatprep.subr.bf16.mxu1 %v1277_v18  ;;  %v534_v16 = vld [vmem:[#allocation5 + $0x5] ss:$8 sm:$0xf]  ;;  %v1595_v17 = vrot.slane %v614_v8, %v1576_v4  ;;  %v1598_v18 = vrot.slane %v614_v8, %v1578_v5  ;;  %vm648_vm3 = vcmp.lt.s32.totalorder %v1574_v3, 111  ;;  %vm528_vm4 = vcmp.lt.s32.totalorder %v1574_v3, 127 }
  0x2f   :  { %vm448_vm5 = vcmp.lt.s32.totalorder %v1574_v3, 15  ;;  %vm488_vm6 = vcmp.lt.s32.totalorder %v1574_v3, 1  ;;  %vm369_vm7 = vcmp.lt.s32.totalorder %v1574_v3, 17  ;;  %vm408_vm8 = vcmp.lt.s32.totalorder %v1574_v3, 16 }
  0x31   :  { %273 = vmatpush1.bf16.msra.mxu0 %v1279_v19  ;;  %314 = vmatpush1.bf16.msra.mxu1 %v1280_v20  ;;  %v1602_v19 = vrot.slane %v654_v11, %v1580_v9  ;;  %v1605_v20 = vrot.slane %v654_v11, %v1582_v10 }
  0x32   :  { %274 = vmatprep.subr.bf16.mxu0 %v1281_v21  ;;  %315 = vmatprep.subr.bf16.mxu1 %v1283_v22  ;;  %v1608_v21 = vrot.slane %v654_v11, %v1576_v4  ;;  %v1611_v22 = vrot.slane %v654_v11, %v1578_v5 }
  0x35   :  { %275 = vmatpush1.bf16.msra.mxu0 %v1285_v23  ;;  %316 = vmatpush1.bf16.msra.mxu1 %v1286_v24  ;;  %v1614_v23 = vrot.slane %v614_v8, %v1580_v9  ;;  %v1617_v24 = vrot.slane %v614_v8, %v1582_v10 }
  0x36   :  { %276 = vmatprep.subr.bf16.mxu0 %v1287_v25  ;;  %317 = vmatprep.subr.bf16.mxu1 %v1289_v26  ;;  %v1621_v25 = vrot.slane %v534_v16, %v1576_v4  ;;  %v1624_v26 = vrot.slane %v534_v16, %v1578_v5 }
  0x39   :  { %277 = vmatpush1.bf16.msra.mxu0 %v1291_v27  ;;  %318 = vmatpush1.bf16.msra.mxu1 %v1292_v28 }
  0x3a   :  { %278 = vmatprep.subr.bf16.mxu0 %v1293_v29  ;;  %319 = vmatprep.subr.bf16.mxu1 %v1295_v30 }
  0x3d   :  { %279 = vmatpush1.bf16.msra.mxu0 %v1297_v31  ;;  %320 = vmatpush1.bf16.msra.mxu1 %v1298_v32  ;;  %v1636_v32 = vrot.slane %v534_v16, %v1580_v9 }
  0x40   :  { %297 = vmatmul.mubr.bf16.vlgmr.msra.gmra.mxu0 %v71_v33  ;;  %338 = vmatmul.mubr.bf16.vlgmr.msra.gmra.mxu1 %v71_v33 }
  0x41   :  { %755 = vmatprep.mubr.bf16.mxu0 %v1377_v0  ;;  %796 = vmatprep.mubr.bf16.mxu1 %v1377_v0 }
 0x100   :  { %v298_v38 = vpop.f32.mrf.mxu0  ;;  %v339_v39 = vpop.f32.mrf.mxu1 }
 0x101   :  { %v1474_v40 = vsel %vm354_vm0, %v298_v38, %v350_v36  ;;  %v1477_v41 = vsel %vm354_vm0, %v339_v39, %v351_v37 }
 0x102   :  { %644 = vrot.lane.b32.xlu1 %v1477_v41, %s1378_s0  ;;  %v341_v42 = vpop.f32.mrf.mxu1  ;;  %640 = vrot.lane.b32.xlu0 %v1474_v40, %s1378_s0  ;;  %v300_v43 = vpop.f32.mrf.mxu0 }
 0x103   :  { %v1504_v48 = vsel %vm354_vm0, %v300_v43, %v346_v34  ;;  %v1515_v49 = vsel %vm354_vm0, %v341_v42, %v347_v35 }
 0x104   :  { %v302_v44 = vpop.f32.mrf.mxu0  ;;  %v343_v45 = vpop.f32.mrf.mxu1 }
 0x106   :  { %v344_v46 = vpop.f32.mrf.mxu1  ;;  %600 = vrot.lane.b32.xlu1 %v1474_v40, %s1379_s1  ;;  %564 = vrot.lane.b32.xlu0 %v1477_v41, %s1380_s21  ;;  %v303_v47 = vpop.f32.mrf.mxu0 }
 0x107   :  { %v1656_v46 = vrot.slane %v534_v16, %v1582_v10 }
 0x10a   :  { %524 = vrot.lane.b32.xlu1 %v1477_v41, %s1381_s22  ;;  %604 = vrot.lane.b32.xlu0 %v1477_v41, %s1379_s1 }
 0x10e   :  { %440 = vrot.lane.b32.xlu1 %v1474_v40, %s1382_s23  ;;  %560 = vrot.lane.b32.xlu0 %v1474_v40, %s1380_s21 }
 0x112   :  { %480 = vrot.lane.b32.xlu1 %v1474_v40, %s1383_s24  ;;  %520 = vrot.lane.b32.xlu0 %v1474_v40, %s1381_s22 }
 0x116   :  { %484 = vrot.lane.b32.xlu1 %v1477_v41, %s1383_s24  ;;  %359 = vrot.lane.b32.xlu0 %v1474_v40, %s1384_s26 }
 0x11a   :  { %400 = vrot.lane.b32.xlu0 %v1474_v40, %s1373_s25  ;;  %562 = vrot.lane.b32.xlu1 %v1504_v48, %s1380_s21 }
 0x11e   :  { %444 = vrot.lane.b32.xlu0 %v1477_v41, %s1382_s23  ;;  %602 = vrot.lane.b32.xlu1 %v1504_v48, %s1379_s1 }
 0x122   :  { %646 = vrot.lane.b32.xlu1 %v1515_v49, %s1378_s0  ;;  %642 = vrot.lane.b32.xlu0 %v1504_v48, %s1378_s0 }
 0x126   :  { %606 = vrot.lane.b32.xlu1 %v1515_v49, %s1379_s1  ;;  %522 = vrot.lane.b32.xlu0 %v1504_v48, %s1381_s22 }
 0x12a   :  { %526 = vrot.lane.b32.xlu1 %v1515_v49, %s1381_s22  ;;  %566 = vrot.lane.b32.xlu0 %v1515_v49, %s1380_s21 }
 0x12e   :  { %486 = vrot.lane.b32.xlu1 %v1515_v49, %s1383_s24  ;;  %442 = vrot.lane.b32.xlu0 %v1504_v48, %s1382_s23 }
 0x132   :  { %361 = vrot.lane.b32.xlu1 %v1504_v48, %s1384_s26  ;;  %482 = vrot.lane.b32.xlu0 %v1504_v48, %s1383_s24 }
 0x136   :  { %402 = vrot.lane.b32.xlu1 %v1504_v48, %s1373_s25  ;;  %446 = vrot.lane.b32.xlu0 %v1515_v49, %s1382_s23 }
 0x13a   :  { %406 = vrot.lane.b32.xlu1 %v1515_v49, %s1373_s25  ;;  %365 = vrot.lane.b32.xlu0 %v1515_v49, %s1384_s26 }
 0x13e   :  { %404 = vrot.lane.b32.xlu1 %v1477_v41, %s1373_s25  ;;  %363 = vrot.lane.b32.xlu0 %v1477_v41, %s1384_s26 }
 0x142   :  { %704 = vperm.xlu0 %1249, %v701_v50  }
 0x174   :  { %v645_v51 = vpop.permute.xlu1 %644  ;;  %v641_v52 = vpop.permute.xlu0 %640 }
 0x178   :  { %v1552_v53 = vpop.permute.xlu1 %600  ;;  %v1554_v54 = vpop.permute.xlu0 %564 }
 0x17c   :  { %v1556_v55 = vpop.permute.xlu1 %524  ;;  %v1558_v56 = vpop.permute.xlu0 %604 }
 0x180   :  { %v1560_v57 = vpop.permute.xlu1 %440  ;;  %v1562_v58 = vpop.permute.xlu0 %560 }
 0x184   :  { %v1564_v59 = vpop.permute.xlu1 %480  ;;  %v1566_v60 = vpop.permute.xlu0 %520 }
 0x188   :  { %v1568_v62 = vpop.permute.xlu1 %484  ;;  %v1570_v63 = vpop.permute.xlu0 %359 }
 0x18c   :  { %v1572_v2 = vpop.permute.xlu0 %400  ;;  %v563_v7 = vpop.permute.xlu1 %562 }
 0x18d   :  { %v570_v27 = vsel %vm568_vm1, %v563_v7, %v1554_v54  ;;  %v571_v43 = vsel %vm568_vm1, %v1562_v58, %v563_v7 }
 0x18e   :  { %v597_v8 = vmul.f32 %v1589_v13, %v570_v27  ;;  %v596_v16 = vmul.f32 %v1586_v12, %v571_v43  ;;  %v1674_v27 = vrot.slane %v574_v6, %v1580_v9 }
 0x190   :  { %v1591_v14 = vpop.permute.xlu0 %444  ;;  %v603_v15 = vpop.permute.xlu1 %602 }
 0x191   :  { %v610_v28 = vsel %vm608_vm2, %v603_v15, %v1558_v56  ;;  %v611_v29 = vsel %vm608_vm2, %v1552_v53, %v603_v15 }
 0x192   :  { %v636_v44 = vmul.f32 %v1595_v17, %v611_v29  ;;  %v637_v45 = vmul.f32 %v1598_v18, %v610_v28 }
 0x194   :  { %v647_v30 = vpop.permute.xlu1 %646  ;;  %v643_v31 = vpop.permute.xlu0 %642 }
 0x195   :  { %v649_v33 = vsel %vm648_vm3, %v645_v51, %v647_v30  ;;  %v652_v34 = vsel %vm648_vm3, %v647_v30, %v641_v52  ;;  %v650_v35 = vsel %vm648_vm3, %v643_v31, %v645_v51  ;;  %v651_v36 = vsel %vm648_vm3, %v641_v52, %v643_v31 }
 0x196   :  { %v678_v37 = vmul.f32 %v1602_v19, %v649_v33  ;;  %v679_v38 = vmul.f32 %v1605_v20, %v652_v34  ;;  %v676_v39 = vmul.f32 %v1608_v21, %v651_v36  ;;  %v677_v42 = vmul.f32 %v1611_v22, %v650_v35 }
 0x197   :  { %v693_v31 = vpack.c.bf16 %v637_v45, %v597_v8  ;;  %v692_v33 = vpack.c.bf16 %v636_v44, %v596_v16 }
 0x198   :  { %v698_v47 = vpack.c.bf16 %v678_v37, %v678_v37  ;;  %v699_v50 = vpack.c.bf16 %v679_v38, %v679_v38  ;;  %v696_v51 = vpack.c.bf16 %v676_v39, %v676_v39  ;;  %v697_v52 = vpack.c.bf16 %v677_v42, %v677_v42  ;;  %v607_v61 = vpop.permute.xlu1 %606  ;;  %v523_v1 = vpop.permute.xlu0 %522 }
 0x199   :  { %v609_v11 = vsel %vm608_vm2, %v1558_v56, %v607_v61  ;;  %v612_v7 = vsel %vm608_vm2, %v607_v61, %v1552_v53  ;;  %v530_v15 = vsel %vm528_vm4, %v523_v1, %v1556_v55  ;;  %v531_v28 = vsel %vm528_vm4, %v1566_v60, %v523_v1  ;;  %v1703_v1 = vld [vmem:[#allocation5] ss:$8 sm:$0xf] }
 0x19a   :  { %1226 = vmatprep.subr.msk.bf16.mxu0 %vm354_vm0, %v697_v52  ;;  %v1677_v56 = vrot.slane %v574_v6, %v1582_v10  ;;  %v557_v53 = vmul.f32 %v1624_v26, %v530_v15  ;;  %1228 = vmatprep.subr.msk.bf16.mxu1 %vm354_vm0, %v699_v50  ;;  %v712_v29 = vsel %vm354_vm0, %v696_v51, 0  ;;  %v718_v30 = vsel %vm354_vm0, %v698_v47, 0  ;;  %v454_v51 = vld [vmem:[#allocation5 + $0x2] ss:$8 sm:$0xf] }
 0x19b   :  { %v638_v34 = vmul.f32 %v1614_v23, %v609_v11  ;;  %v639_v35 = vmul.f32 %v1617_v24, %v612_v7  ;;  %730 = vmatpush1.bf16.msra.mxu0 %v712_v29  ;;  %771 = vmatpush1.bf16.msra.mxu1 %v718_v30  ;;  %v556_v6 = vmul.f32 %v1621_v25, %v531_v28  ;;  %v414_v11 = vld [vmem:[#allocation5 + $0x1] ss:$8 sm:$0xf] }
 0x19c   :  { %v527_v36 = vpop.permute.xlu1 %526  ;;  %v567_v37 = vpop.permute.xlu0 %566  ;;  %731 = vmatprep.subr.bf16.mxu0 %v693_v31  ;;  %v689_v50 = vpack.c.bf16 %v557_v53, %v1504_v48  ;;  %v1712_v7 = vrot.slane %v454_v51, %v1578_v5  ;;  %v1734_v31 = vrot.slane %v414_v11, %v1578_v5 }
 0x19d   :  { %v532_v38 = vsel %vm528_vm4, %v527_v36, %v1566_v60  ;;  %v569_v39 = vsel %vm568_vm1, %v1554_v54, %v567_v37  ;;  %v572_v42 = vsel %vm568_vm1, %v567_v37, %v1562_v58  ;;  %v529_v43 = vsel %vm528_vm4, %v1556_v55, %v527_v36  ;;  %v494_v60 = vld [vmem:[#allocation5 + $0x3] ss:$8 sm:$0xf] }
 0x19e   :  { %v559_v44 = vmul.f32 %v1656_v46, %v532_v38  ;;  %v598_v45 = vmul.f32 %v1674_v27, %v569_v39  ;;  %v599_v47 = vmul.f32 %v1677_v56, %v572_v42  ;;  %v558_v55 = vmul.f32 %v1636_v32, %v529_v43 }
 0x19f   :  { %732 = vmatpush1.bf16.msra.mxu0 %v692_v33  ;;  %v1708_v8 = vrot.slane %v494_v60, %v1576_v4  ;;  %v688_v48 = vpack.c.bf16 %v556_v6, %v1474_v40  ;;  %v1716_v16 = vrot.slane %v494_v60, %v1578_v5  ;;  %v1719_v28 = vrot.slane %v494_v60, %v1582_v10 }
 0x1a0   :  { %v694_v52 = vpack.c.bf16 %v638_v34, %v598_v45  ;;  %v487_v54 = vpop.permute.xlu1 %486  ;;  %v443_v58 = vpop.permute.xlu0 %442  ;;  %v695_v61 = vpack.c.bf16 %v639_v35, %v599_v47  ;;  %733 = vmatprep.subr.bf16.mxu0 %v689_v50  ;;  %v691_v15 = vpack.c.bf16 %v559_v44, %v1515_v49  ;;  %v1727_v40 = vrot.slane %v1703_v1, %v1578_v5 }
 0x1a1   :  { %v451_v53 = vsel %vm448_vm5, %v1560_v57, %v443_v58  ;;  %v1730_v49 = vrot.slane %v494_v60, %v1580_v9  ;;  %v1737_v33 = vrot.slane %v454_v51, %v1576_v4  ;;  %v690_v34 = vpack.c.bf16 %v558_v55, %v1477_v41 }
 0x1a2   :  { %772 = vmatprep.subr.bf16.mxu1 %v695_v61  ;;  %v489_v35 = vsel %vm488_vm6, %v1568_v62, %v487_v54  ;;  %v492_v36 = vsel %vm488_vm6, %v487_v54, %v1564_v59  ;;  %v477_v5 = vmul.f32 %v1712_v7, %v451_v53  ;;  %v1755_v38 = vrot.slane %v454_v51, %v1582_v10 }
 0x1a3   :  { %773 = vmatpush1.bf16.msra.mxu1 %v694_v52  ;;  %734 = vmatpush1.bf16.msra.mxu0 %v688_v48  ;;  %v1758_v39 = vrot.slane %v454_v51, %v1580_v9  ;;  %v1768_v43 = vrot.slane %v1703_v1, %v1576_v4  ;;  %v519_v44 = vmul.f32 %v1719_v28, %v489_v35 }
 0x1a4   :  { %v362_v29 = vpop.permute.xlu1 %361  ;;  %774 = vmatprep.subr.bf16.mxu1 %v691_v15  ;;  %v483_v30 = vpop.permute.xlu0 %482  ;;  %v450_v45 = vsel %vm448_vm5, %v443_v58, %v1591_v14  ;;  %v1791_v53 = vrot.slane %v414_v11, %v1580_v9 }
 0x1a5   :  { %v491_v37 = vsel %vm488_vm6, %v1564_v59, %v483_v30  ;;  %v490_v6 = vsel %vm488_vm6, %v483_v30, %v1568_v62  ;;  %v372_v42 = vsel %vm369_vm7, %v1570_v63, %v362_v29  ;;  %v1764_v59 = vrot.slane %v414_v11, %v1576_v4 }
 0x1a6   :  { %v517_v41 = vmul.f32 %v1716_v16, %v491_v37  ;;  %v516_v62 = vmul.f32 %v1708_v8, %v492_v36  ;;  %v518_v51 = vmul.f32 %v1730_v49, %v490_v6  ;;  %v397_v61 = vmul.f32 %v1727_v40, %v372_v42 }
 0x1a7   :  { %775 = vmatpush1.bf16.msra.mxu1 %v690_v34  ;;  %v478_v15 = vmul.f32 %v1758_v39, %v450_v45 }
 0x1a8   :  { %v403_v47 = vpop.permute.xlu1 %402  ;;  %v447_v60 = vpop.permute.xlu0 %446  ;;  %v685_v50 = vpack.c.bf16 %v517_v41, %v477_v5  ;;  %v1804_v41 = vrot.slane %v1703_v1, %v1580_v9 }
 0x1a9   :  { %v411_v52 = vsel %vm408_vm8, %v1572_v2, %v403_v47  ;;  %v449_v4 = vsel %vm448_vm5, %v1591_v14, %v447_v60  ;;  %v452_v54 = vsel %vm448_vm5, %v447_v60, %v1560_v57  ;;  %v1794_v57 = vrot.slane %v414_v11, %v1582_v10 }
 0x1aa   :  { %v437_v58 = vmul.f32 %v1734_v31, %v411_v52  ;;  %v476_v55 = vmul.f32 %v1737_v33, %v452_v54  ;;  %v479_v48 = vmul.f32 %v1755_v38, %v449_v4  ;;  %735 = vmatprep.subr.bf16.mxu0 %v685_v50  ;;  %v686_v37 = vpack.c.bf16 %v518_v51, %v478_v15  ;;  %v700_v4 = vld [vmem:[%s2034_s4] sm:$0xf] }
 0x1ab   :  { %v1810_v11 = vrot.slane %v1703_v1, %v1582_v10 }
 0x1ac   :  { %v684_v30 = vpack.c.bf16 %v516_v62, %v476_v55  ;;  %v407_v14 = vpop.permute.xlu1 %406  ;;  %v366_v34 = vpop.permute.xlu0 %365  ;;  %v687_v35 = vpack.c.bf16 %v519_v44, %v479_v48  ;;  %v681_v36 = vpack.c.bf16 %v437_v58, %v397_v61 }
 0x1ad   :  { %v412_v5 = vsel %vm408_vm8, %v407_v14, %v1572_v2  ;;  %v373_v6 = vsel %vm369_vm7, %v366_v34, %v1570_v63 }
 0x1ae   :  { %v436_v42 = vmul.f32 %v1764_v59, %v412_v5  ;;  %v396_v62 = vmul.f32 %v1768_v43, %v373_v6  ;;  %736 = vmatpush1.bf16.msra.mxu0 %v684_v30  ;;  %776 = vmatprep.subr.bf16.mxu1 %v687_v35 }
 0x1af   :  { %737 = vmatprep.subr.bf16.mxu0 %v681_v36  ;;  %777 = vmatpush1.bf16.msra.mxu1 %v686_v37 }
 0x1b0   :  { %v680_v2 = vpack.c.bf16 %v436_v42, %v396_v62  ;;  %v405_v44 = vpop.permute.xlu1 %404  ;;  %v364_v45 = vpop.permute.xlu0 %363 }
 0x1b1   :  { %v409_v63 = vsel %vm408_vm8, %v405_v44, %v407_v14  ;;  %v410_v9 = vsel %vm408_vm8, %v403_v47, %v405_v44  ;;  %v370_v60 = vsel %vm369_vm7, %v364_v45, %v366_v34  ;;  %v371_v50 = vsel %vm369_vm7, %v362_v29, %v364_v45 }
 0x1b2   :  { %v438_v10 = vmul.f32 %v1791_v53, %v410_v9  ;;  %v439_v1 = vmul.f32 %v1794_v57, %v409_v63  ;;  %v398_v51 = vmul.f32 %v1804_v41, %v371_v50  ;;  %v399_v52 = vmul.f32 %v1810_v11, %v370_v60  ;;  %738 = vmatpush1.bf16.msra.mxu0 %v680_v2 }
 0x1b4   :  { %v682_v47 = vpack.c.bf16 %v438_v10, %v398_v51  ;;  %v683_v54 = vpack.c.bf16 %v439_v1, %v399_v52 }
 0x1b5   :  { %1227 = vmatmul.mubr.msk.bf16.vlgmr.msra.gmra.mxu0 %vm707_vm9, %v700_v4 }
 0x1b6   :  { %778 = vmatprep.subr.bf16.mxu1 %v683_v54  ;;  %1066 = vmatprep.mubr.bf16.mxu0 %v1377_v0  ;;  %v842_v54 = vld [vmem:[%s2037_s7] sm:$0xff] }
 0x1b7   :  { %779 = vmatpush1.bf16.msra.mxu1 %v682_v47 }
 0x1ba   :  { %1229 = vmatmul.mubr.msk.bf16.vlgmr.msra.gmra.mxu1 %vm707_vm9, %v700_v4 }
 0x1bb   :  { %1107 = vmatprep.mubr.bf16.mxu1 %v1377_v0  ;;  %v832_v0 = vld [vmem:[%s2036_s6] sm:$0xff] }
 0x1bd   :  { %v705_v29 = vpop.permute.xlu0 %704 }
 0x275   :  { %v757_v61 = vpop.f32.mrf.mxu0 }
 0x276   :  { %v758_v58 = vadd.f32 %v757_v61, %v705_v29 }
 0x277   :  { %v759_v55 = vpop.f32.mrf.mxu0 }
 0x278   :  { %v760_v48 = vadd.f32 %v759_v55, %v705_v29 }
 0x279   :  { %v761_v15 = vpop.f32.mrf.mxu0 }
 0x27a   :  { %v805_v30 = vadd.f32 %v760_v48, %v758_v58  ;;  %v798_v14 = vpop.f32.mrf.mxu1 }
 0x27b   :  { %v799_v34 = vadd.f32 %v798_v14, %v705_v29  ;;  %v762_v35 = vpop.f32.mrf.mxu0 }
 0x27c   :  { %v800_v36 = vpop.f32.mrf.mxu1 }
 0x27d   :  { %v806_v37 = vadd.f32 %v805_v30, %v799_v34  ;;  %v801_v5 = vadd.f32 %v800_v36, %v705_v29 }
 0x27e   :  { %v802_v6 = vpop.f32.mrf.mxu1 }
 0x27f   :  { %v807_v42 = vadd.f32 %v806_v37, %v801_v5 }
 0x280   :  { %v803_v62 = vpop.f32.mrf.mxu1 }
 0x281   :  { %808 = vadd.xlane.f32.xlu1 %v807_v42 }
 0x292   :  { %835 = vperm.xlu1 %1250, %v832_v0  }
 0x30a   :  { %v809_v2 = vpop.xlane.xlu1 %808 }
 0x30b   :  { %v811_v44 = vmul.f32 0.001953125, %v809_v2 }
 0x30d   :  { %v812_v45 = vsub.f32 %v758_v58, %v811_v44  ;;  %v813_v63 = vsub.f32 %v760_v48, %v811_v44  ;;  %v814_v9 = vsub.f32 %v799_v34, %v811_v44  ;;  %v815_v60 = vsub.f32 %v801_v5, %v811_v44 }
 0x30e   :  { %v836_v48 = vpop.permute.xlu1 %835 }
 0x30f   :  { %v816_v50 = vmul.f32 %v812_v45, %v812_v45  ;;  %v817_v10 = vmul.f32 %v813_v63, %v813_v63  ;;  %v818_v1 = vmul.f32 %v814_v9, %v814_v9  ;;  %v819_v52 = vmul.f32 %v815_v60, %v815_v60 }
 0x311   :  { %v820_v51 = vadd.f32 %v817_v10, %v816_v50 }
 0x313   :  { %v821_v4 = vadd.f32 %v820_v51, %v818_v1  ;;  %v1013_v51 = vld [vmem:[%s2039_s9] sm:$0xff] }
 0x315   :  { %v822_v47 = vadd.f32 %v821_v4, %v819_v52 }
 0x317   :  { %823 = vadd.xlane.f32.xlu0 %v822_v47 }
 0x32d   :  { %845 = vperm.xlu0 %1249, %v842_v54  }
 0x3a0   :  { %v824_v29 = vpop.xlane.xlu0 %823 }
 0x3a1   :  { %v825_v61 = vmul.f32 0.001953125, %v824_v29 }
 0x3a3   :  { %v826_v55 = vadd.f32 1e-05, %v825_v61 }
 0x3a5   :  { %1301 = vrsqrt.f32 %v826_v55 }
 0x3a8   :  { %v846_v37 = vpop.permute.xlu0 %845 }
 0x3b2   :  { %v1302_v58 = vpop.eup %1301 }
 0x3b3   :  { %v828_v15 = vmul.f32 %v1302_v58, %v812_v45  ;;  %v829_v30 = vmul.f32 %v1302_v58, %v813_v63  ;;  %v830_v14 = vmul.f32 %v1302_v58, %v814_v9  ;;  %v831_v2 = vmul.f32 %v1302_v58, %v815_v60 }
 0x3b5   :  { %v838_v34 = vmul.f32 %v836_v48, %v828_v15  ;;  %v839_v35 = vmul.f32 %v836_v48, %v829_v30  ;;  %v840_v36 = vmul.f32 %v836_v48, %v830_v14  ;;  %v841_v45 = vmul.f32 %v836_v48, %v831_v2 }
 0x3b7   :  { %v848_v5 = vadd.f32 %v846_v37, %v838_v34  ;;  %v850_v6 = vadd.f32 %v846_v37, %v840_v36  ;;  %v849_v42 = vadd.f32 %v846_v37, %v839_v35  ;;  %v851_v9 = vadd.f32 %v846_v37, %v841_v45 }
 0x3b9   :  { %vm852_vm10 = vcmp.ge.f32.partialorder %v848_v5, 0.0  ;;  %vm854_vm11 = vcmp.ge.f32.partialorder %v850_v6, 0.0  ;;  %v856_v62 = vmul.f32 0.01, %v848_v5  ;;  %v858_v0 = vmul.f32 0.01, %v850_v6 }
 0x3ba   :  { %v857_v44 = vmul.f32 0.01, %v849_v42  ;;  %vm853_vm12 = vcmp.ge.f32.partialorder %v849_v42, 0.0  ;;  %v859_v60 = vmul.f32 0.01, %v851_v9  ;;  %vm855_vm13 = vcmp.ge.f32.partialorder %v851_v9, 0.0 }
 0x3bb   :  { %v1837_v50 = vsel %vm852_vm10, %v848_v5, %v856_v62  ;;  %v1839_v10 = vsel %vm854_vm11, %v850_v6, %v858_v0 }
 0x3bc   :  { %980 = vrot.lane.b32.xlu0 %v1839_v10, %s1378_s0  ;;  %976 = vrot.lane.b32.xlu1 %v1837_v50, %s1378_s0  ;;  %v1845_v63 = vsel %vm853_vm12, %v849_v42, %v857_v44  ;;  %v1859_v1 = vsel %vm855_vm13, %v851_v9, %v859_v60 }
 0x3c0   :  { %948 = vrot.lane.b32.xlu0 %v1839_v10, %s1380_s21  ;;  %978 = vrot.lane.b32.xlu1 %v1845_v63, %s1378_s0 }
 0x3c4   :  { %964 = vrot.lane.b32.xlu0 %v1839_v10, %s1379_s1  ;;  %946 = vrot.lane.b32.xlu1 %v1845_v63, %s1380_s21 }
 0x3c8   :  { %944 = vrot.lane.b32.xlu0 %v1837_v50, %s1380_s21  ;;  %962 = vrot.lane.b32.xlu1 %v1845_v63, %s1379_s1 }
 0x3cc   :  { %930 = vrot.lane.b32.xlu0 %v1845_v63, %s1381_s22  ;;  %982 = vrot.lane.b32.xlu1 %v1859_v1, %s1378_s0 }
 0x3d0   :  { %950 = vrot.lane.b32.xlu0 %v1859_v1, %s1380_s21  ;;  %960 = vrot.lane.b32.xlu1 %v1837_v50, %s1379_s1 }
 0x3d4   :  { %928 = vrot.lane.b32.xlu0 %v1837_v50, %s1381_s22  ;;  %932 = vrot.lane.b32.xlu1 %v1839_v10, %s1381_s22 }
 0x3d8   :  { %898 = vrot.lane.b32.xlu0 %v1845_v63, %s1382_s23  ;;  %966 = vrot.lane.b32.xlu1 %v1859_v1, %s1379_s1 }
 0x3dc   :  { %914 = vrot.lane.b32.xlu0 %v1845_v63, %s1383_s24  ;;  %896 = vrot.lane.b32.xlu1 %v1837_v50, %s1382_s23 }
 0x3e0   :  { %902 = vrot.lane.b32.xlu0 %v1859_v1, %s1382_s23  ;;  %912 = vrot.lane.b32.xlu1 %v1837_v50, %s1383_s24 }
 0x3e4   :  { %864 = vrot.lane.b32.xlu0 %v1837_v50, %s1384_s26  ;;  %934 = vrot.lane.b32.xlu1 %v1859_v1, %s1381_s22 }
 0x3e8   :  { %880 = vrot.lane.b32.xlu0 %v1837_v50, %s1373_s25  ;;  %918 = vrot.lane.b32.xlu1 %v1859_v1, %s1383_s24 }
 0x3ec   :  { %900 = vrot.lane.b32.xlu0 %v1839_v10, %s1382_s23  ;;  %866 = vrot.lane.b32.xlu1 %v1845_v63, %s1384_s26 }
 0x3f0   :  { %870 = vrot.lane.b32.xlu0 %v1859_v1, %s1384_s26  ;;  %882 = vrot.lane.b32.xlu1 %v1845_v63, %s1373_s25 }
 0x3f4   :  { %868 = vrot.lane.b32.xlu0 %v1839_v10, %s1384_s26  ;;  %916 = vrot.lane.b32.xlu1 %v1839_v10, %s1383_s24 }
 0x3f8   :  { %1016 = vperm.xlu0 %1249, %v1013_v51   ;;  %886 = vrot.lane.b32.xlu1 %v1859_v1, %s1373_s25 }
 0x3fc   :  { %884 = vrot.lane.b32.xlu1 %v1839_v10, %s1373_s25 }
 0x42e   :  { %v981_v52 = vpop.permute.xlu0 %980  ;;  %v977_v4 = vpop.permute.xlu1 %976 }
 0x432   :  { %v949_v47 = vpop.permute.xlu0 %948  ;;  %v979_v54 = vpop.permute.xlu1 %978 }
 0x433   :  { %v985_v29 = vsel %vm648_vm3, %v979_v54, %v981_v52  ;;  %v986_v61 = vsel %vm648_vm3, %v977_v4, %v979_v54 }
 0x434   :  { %v988_v55 = vmul.f32 %v986_v61, %v1608_v21  ;;  %v989_v58 = vmul.f32 %v985_v29, %v1611_v22 }
 0x436   :  { %v1008_v48 = vpack.c.bf16 %v988_v55, %v988_v55  ;;  %v1009_v15 = vpack.c.bf16 %v989_v58, %v989_v58  ;;  %v965_v30 = vpop.permute.xlu0 %964  ;;  %v947_v14 = vpop.permute.xlu1 %946 }
 0x437   :  { %v953_v35 = vsel %vm568_vm1, %v947_v14, %v949_v47 }
 0x438   :  { %1230 = vmatprep.subr.msk.bf16.mxu0 %vm354_vm0, %v1009_v15  ;;  %v1023_v34 = vsel %vm354_vm0, %v1008_v48, 0  ;;  %v957_v21 = vmul.f32 %v953_v35, %v1589_v13 }
 0x439   :  { %1041 = vmatpush1.bf16.msra.mxu0 %v1023_v34 }
 0x43a   :  { %v945_v36 = vpop.permute.xlu0 %944  ;;  %v963_v37 = vpop.permute.xlu1 %962 }
 0x43b   :  { %v969_v5 = vsel %vm608_vm2, %v963_v37, %v965_v30  ;;  %v954_v9 = vsel %vm568_vm1, %v945_v36, %v947_v14 }
 0x43c   :  { %v973_v22 = vmul.f32 %v969_v5, %v1598_v18 }
 0x43e   :  { %v931_v6 = vpop.permute.xlu0 %930  ;;  %v983_v42 = vpop.permute.xlu1 %982  ;;  %v1005_v62 = vpack.c.bf16 %v973_v22, %v957_v21 }
 0x43f   :  { %v984_v0 = vsel %vm648_vm3, %v981_v52, %v983_v42  ;;  %v987_v2 = vsel %vm648_vm3, %v983_v42, %v977_v4  ;;  %v956_v52 = vmul.f32 %v954_v9, %v1586_v12 }
 0x440   :  { %v990_v44 = vmul.f32 %v984_v0, %v1602_v19  ;;  %v991_v45 = vmul.f32 %v987_v2, %v1605_v20  ;;  %1042 = vmatprep.subr.bf16.mxu0 %v1005_v62 }
 0x442   :  { %v1010_v13 = vpack.c.bf16 %v990_v44, %v990_v44  ;;  %v1011_v60 = vpack.c.bf16 %v991_v45, %v991_v45  ;;  %v951_v18 = vpop.permute.xlu0 %950  ;;  %v961_v51 = vpop.permute.xlu1 %960 }
 0x443   :  { %v970_v54 = vsel %vm608_vm2, %v961_v51, %v963_v37  ;;  %v955_v15 = vsel %vm568_vm1, %v951_v18, %v945_v36 }
 0x444   :  { %v972_v29 = vmul.f32 %v970_v54, %v1595_v17  ;;  %1232 = vmatprep.subr.msk.bf16.mxu1 %vm354_vm0, %v1011_v60  ;;  %v1029_v19 = vsel %vm354_vm0, %v1010_v13, 0  ;;  %v952_v17 = vsel %vm568_vm1, %v949_v47, %v951_v18  ;;  %v959_v21 = vmul.f32 %v955_v15, %v1677_v56 }
 0x445   :  { %1082 = vmatpush1.bf16.msra.mxu1 %v1029_v19 }
 0x446   :  { %v1004_v20 = vpack.c.bf16 %v972_v29, %v956_v52  ;;  %v929_v4 = vpop.permute.xlu0 %928  ;;  %v933_v61 = vpop.permute.xlu1 %932 }
 0x447   :  { %v938_v55 = vsel %vm528_vm4, %v929_v4, %v931_v6  ;;  %v937_v58 = vsel %vm528_vm4, %v931_v6, %v933_v61 }
 0x448   :  { %v940_v48 = vmul.f32 %v938_v55, %v1621_v25  ;;  %v941_v12 = vmul.f32 %v937_v58, %v1624_v26  ;;  %1043 = vmatpush1.bf16.msra.mxu0 %v1004_v20  ;;  %v958_v26 = vmul.f32 %v952_v17, %v1674_v27 }
 0x44a   :  { %v1000_v14 = vpack.c.bf16 %v940_v48, %v1837_v50  ;;  %v899_v34 = vpop.permute.xlu0 %898  ;;  %v967_v35 = vpop.permute.xlu1 %966  ;;  %v1001_v37 = vpack.c.bf16 %v941_v12, %v1845_v63 }
 0x44b   :  { %v968_v5 = vsel %vm608_vm2, %v965_v30, %v967_v35  ;;  %v971_v25 = vsel %vm608_vm2, %v967_v35, %v961_v51 }
 0x44c   :  { %v974_v47 = vmul.f32 %v968_v5, %v1614_v23  ;;  %v975_v36 = vmul.f32 %v971_v25, %v1617_v24  ;;  %1044 = vmatprep.subr.bf16.mxu0 %v1001_v37 }
 0x44d   :  { %1045 = vmatpush1.bf16.msra.mxu0 %v1000_v14 }
 0x44e   :  { %v1006_v50 = vpack.c.bf16 %v974_v47, %v958_v26  ;;  %v915_v22 = vpop.permute.xlu0 %914  ;;  %v897_v6 = vpop.permute.xlu1 %896  ;;  %v1007_v63 = vpack.c.bf16 %v975_v36, %v959_v21 }
 0x44f   :  { %v906_v30 = vsel %vm448_vm5, %v897_v6, %v899_v34 }
 0x450   :  { %1083 = vmatprep.subr.bf16.mxu1 %v1007_v63  ;;  %v909_v23 = vmul.f32 %v906_v30, %v1712_v7  ;;  %v1012_v63 = vld [vmem:[%s2038_s8] sm:$0xf] }
 0x451   :  { %1084 = vmatpush1.bf16.msra.mxu1 %v1006_v50 }
 0x452   :  { %v903_v42 = vpop.permute.xlu0 %902  ;;  %v913_v62 = vpop.permute.xlu1 %912 }
 0x453   :  { %v922_v27 = vsel %vm488_vm6, %v913_v62, %v915_v22  ;;  %v907_v60 = vsel %vm448_vm5, %v903_v42, %v897_v6 }
 0x454   :  { %v925_v24 = vmul.f32 %v922_v27, %v1716_v16  ;;  %v908_v52 = vmul.f32 %v907_v60, %v1737_v33  ;;  %v1152_v60 = vld [vmem:[%s2041_s11] sm:$0xff] }
 0x456   :  { %v865_v56 = vpop.permute.xlu0 %864  ;;  %v935_v0 = vpop.permute.xlu1 %934  ;;  %v997_v2 = vpack.c.bf16 %v925_v24, %v909_v23 }
 0x457   :  { %v936_v44 = vsel %vm528_vm4, %v933_v61, %v935_v0  ;;  %v939_v45 = vsel %vm528_vm4, %v935_v0, %v929_v4 }
 0x458   :  { %v942_v9 = vmul.f32 %v936_v44, %v1636_v32  ;;  %v943_v13 = vmul.f32 %v939_v45, %v1656_v46  ;;  %1046 = vmatprep.subr.bf16.mxu0 %v997_v2 }
 0x45a   :  { %v1002_v7 = vpack.c.bf16 %v942_v9, %v1839_v10  ;;  %v881_v16 = vpop.permute.xlu0 %880  ;;  %v919_v18 = vpop.permute.xlu1 %918  ;;  %v1003_v51 = vpack.c.bf16 %v943_v13, %v1859_v1 }
 0x45b   :  { %v923_v54 = vsel %vm488_vm6, %v919_v18, %v913_v62 }
 0x45c   :  { %v924_v29 = vmul.f32 %v923_v54, %v1708_v8  ;;  %1085 = vmatprep.subr.bf16.mxu1 %v1003_v51 }
 0x45d   :  { %1086 = vmatpush1.bf16.msra.mxu1 %v1002_v7 }
 0x45e   :  { %v996_v32 = vpack.c.bf16 %v924_v29, %v908_v52  ;;  %v901_v46 = vpop.permute.xlu0 %900  ;;  %v867_v19 = vpop.permute.xlu1 %866 }
 0x45f   :  { %v874_v10 = vsel %vm369_vm7, %v865_v56, %v867_v19  ;;  %v904_v8 = vsel %vm448_vm5, %v901_v46, %v903_v42  ;;  %v905_v55 = vsel %vm448_vm5, %v899_v34, %v901_v46 }
 0x460   :  { %1047 = vmatpush1.bf16.msra.mxu0 %v996_v32  ;;  %v877_v4 = vmul.f32 %v874_v10, %v1727_v40  ;;  %v910_v15 = vmul.f32 %v905_v55, %v1758_v39  ;;  %v911_v40 = vmul.f32 %v904_v8, %v1755_v38 }
 0x462   :  { %v883_v20 = vpop.permute.xlu1 %882  ;;  %v871_v61 = vpop.permute.xlu0 %870 }
 0x463   :  { %v890_v1 = vsel %vm408_vm8, %v881_v16, %v883_v20  ;;  %v875_v34 = vsel %vm369_vm7, %v871_v61, %v865_v56 }
 0x464   :  { %v893_v33 = vmul.f32 %v890_v1, %v1734_v31  ;;  %v876_v21 = vmul.f32 %v875_v34, %v1768_v43 }
 0x466   :  { %v917_v58 = vpop.permute.xlu1 %916  ;;  %v993_v48 = vpack.c.bf16 %v893_v33, %v877_v4  ;;  %v869_v35 = vpop.permute.xlu0 %868  ;;  %v1142_v4 = vld [vmem:[%s2040_s10] sm:$0xff]  ;;  %s1385_s10 = smov [#allocation7]  }
 0x467   :  { %v920_v12 = vsel %vm488_vm6, %v917_v58, %v919_v18  ;;  %v921_v17 = vsel %vm488_vm6, %v915_v22, %v917_v58  ;;  %s1184_s11 = sshll.u32 %s1385_s10, 4  ;;  %s1185_s11 = int_to_ptr.vmem [resolvable:$true] %s1184_s11 }
 0x468   :  { %v926_v31 = vmul.f32 %v921_v17, %v1730_v49  ;;  %v927_v14 = vmul.f32 %v920_v12, %v1719_v28  ;;  %1048 = vmatprep.subr.bf16.mxu0 %v993_v48  ;;  %v872_v49 = vsel %vm369_vm7, %v869_v35, %v871_v61  ;;  %v873_v28 = vsel %vm369_vm7, %v867_v19, %v869_v35  ;;  %s1345_s3 = scalar_lea.vmem %s1185_s11, 512  ;;  %p1350_p11 = scmp.lt.s32.totalorder %s1185_s11, %s1185_s11 }
 0x469   :  { %v878_v43 = vmul.f32 %v873_v28, %v1804_v41  ;;  %p1346_p10 = scmp.ne.s32.totalorder %s1185_s11, %s1345_s3  ;;  %p1351_p12 = scmp.lt.s32.totalorder %s1345_s3, %s1345_s3 }
 0x46a   :  { %v998_v37 = vpack.c.bf16 %v926_v31, %v910_v15  ;;  %v887_v5 = vpop.permute.xlu1 %886  ;;  %v999_v25 = vpack.c.bf16 %v927_v14, %v911_v40 }
 0x46b   :  { %v891_v26 = vsel %vm408_vm8, %v887_v5, %v881_v16  ;;  %p1352_p13 = por %p1351_p12, %p1350_p11 }
 0x46c   :  { %v892_v39 = vmul.f32 %v891_v26, %v1764_v59  ;;  %1087 = vmatprep.subr.bf16.mxu1 %v999_v25  ;;  %v879_v59 = vmul.f32 %v872_v49, %v1810_v11 }
 0x46d   :  { %1088 = vmatpush1.bf16.msra.mxu1 %v998_v37  ;;  %p1353_p0 = pnand %p1352_p13, %p1346_p10 }
 0x46e   :  { %v992_v38 = vpack.c.bf16 %v892_v39, %v876_v21  ;;  %v885_v47 = vpop.permute.xlu1 %884 }
 0x46f   :  { %v888_v36 = vsel %vm408_vm8, %v885_v47, %v887_v5  ;;  %v889_v50 = vsel %vm408_vm8, %v883_v20, %v885_v47 }
 0x470   :  { %v894_v22 = vmul.f32 %v889_v50, %v1791_v53  ;;  %v895_v6 = vmul.f32 %v888_v36, %v1794_v57  ;;  %1049 = vmatpush1.bf16.msra.mxu0 %v992_v38 }
 0x472   :  { %v994_v30 = vpack.c.bf16 %v894_v22, %v878_v43  ;;  %v995_v42 = vpack.c.bf16 %v895_v6, %v879_v59 }
 0x473   :  { %1231 = vmatmul.mubr.msk.bf16.vlgmr.msra.gmra.mxu0 %vm707_vm9, %v1012_v63  ;;  %v1017_v41 = vpop.permute.xlu0 %1016 }
 0x474   :  { %1089 = vmatprep.subr.bf16.mxu1 %v995_v42 }
 0x475   :  { %1090 = vmatpush1.bf16.msra.mxu1 %v994_v30 }
 0x478   :  { %1233 = vmatmul.mubr.msk.bf16.vlgmr.msra.gmra.mxu1 %vm707_vm9, %v1012_v63 }
 0x533   :  { %v1068_v3 = vpop.f32.mrf.mxu0 }
 0x534   :  { %v1069_v62 = vadd.f32 %v1068_v3, %v1017_v41 }
 0x535   :  { %v1070_v11 = vpop.f32.mrf.mxu0 }
 0x536   :  { %v1071_v53 = vadd.f32 %v1070_v11, %v1017_v41 }
 0x537   :  { %v1072_v27 = vpop.f32.mrf.mxu0 }
 0x538   :  { %v1116_v57 = vadd.f32 %v1071_v53, %v1069_v62  ;;  %v1109_v23 = vpop.f32.mrf.mxu1 }
 0x539   :  { %v1110_v24 = vadd.f32 %v1109_v23, %v1017_v41  ;;  %v1073_v56 = vpop.f32.mrf.mxu0 }
 0x53a   :  { %v1111_v0 = vpop.f32.mrf.mxu1 }
 0x53b   :  { %v1117_v2 = vadd.f32 %v1116_v57, %v1110_v24  ;;  %v1112_v44 = vadd.f32 %v1111_v0, %v1017_v41 }
 0x53c   :  { %v1113_v45 = vpop.f32.mrf.mxu1 }
 0x53d   :  { %v1118_v9 = vadd.f32 %v1117_v2, %v1112_v44 }
 0x53e   :  { %v1114_v13 = vpop.f32.mrf.mxu1 }
 0x53f   :  { %1119 = vadd.xlane.f32.xlu1 %v1118_v9 }
 0x550   :  { %1155 = vperm.xlu1 %1250, %v1152_v60  }
 0x5c8   :  { %v1120_v7 = vpop.xlane.xlu1 %1119 }
 0x5c9   :  { %v1121_v16 = vmul.f32 0.001953125, %v1120_v7 }
 0x5cb   :  { %v1122_v18 = vsub.f32 %v1069_v62, %v1121_v16  ;;  %v1123_v51 = vsub.f32 %v1071_v53, %v1121_v16  ;;  %v1124_v54 = vsub.f32 %v1110_v24, %v1121_v16  ;;  %v1125_v52 = vsub.f32 %v1112_v44, %v1121_v16 }
 0x5cc   :  { %v1156_v35 = vpop.permute.xlu1 %1155 }
 0x5cd   :  { %v1126_v29 = vmul.f32 %v1122_v18, %v1122_v18  ;;  %v1127_v32 = vmul.f32 %v1123_v51, %v1123_v51  ;;  %v1128_v46 = vmul.f32 %v1124_v54, %v1124_v54  ;;  %v1129_v10 = vmul.f32 %v1125_v52, %v1125_v52 }
 0x5cf   :  { %v1130_v19 = vadd.f32 %v1127_v32, %v1126_v29 }
 0x5d1   :  { %v1131_v20 = vadd.f32 %v1130_v19, %v1128_v46 }
 0x5d3   :  { %v1132_v1 = vadd.f32 %v1131_v20, %v1129_v10 }
 0x5d5   :  { %1133 = vadd.xlane.f32.xlu0 %v1132_v1 }
 0x5eb   :  { %1145 = vperm.xlu0 %1249, %v1142_v4  }
 0x65e   :  { %v1134_v61 = vpop.xlane.xlu0 %1133 }
 0x65f   :  { %v1135_v33 = vmul.f32 0.001953125, %v1134_v61 }
 0x661   :  { %v1136_v8 = vadd.f32 1e-05, %v1135_v33 }
 0x663   :  { %1303 = vrsqrt.f32 %v1136_v8 }
 0x666   :  { %v1146_v15 = vpop.permute.xlu0 %1145 }
 0x670   :  { %v1304_v55 = vpop.eup %1303 }
 0x671   :  { %v1138_v58 = vmul.f32 %v1304_v55, %v1122_v18  ;;  %v1139_v48 = vmul.f32 %v1304_v55, %v1123_v51  ;;  %v1140_v12 = vmul.f32 %v1304_v55, %v1124_v54  ;;  %v1141_v17 = vmul.f32 %v1304_v55, %v1125_v52 }
 0x673   :  { %v1148_v40 = vmul.f32 %v1146_v15, %v1138_v58  ;;  %v1149_v31 = vmul.f32 %v1146_v15, %v1139_v48  ;;  %v1150_v14 = vmul.f32 %v1146_v15, %v1140_v12  ;;  %v1151_v34 = vmul.f32 %v1146_v15, %v1141_v17 }
 0x675   :  { %v1158_v37 = vadd.f32 %v1156_v35, %v1148_v40  ;;  %v1159_v5 = vadd.f32 %v1156_v35, %v1149_v31  ;;  %v1160_v25 = vadd.f32 %v1156_v35, %v1150_v14  ;;  %v1161_v26 = vadd.f32 %v1156_v35, %v1151_v34 }
 0x677   :  { %vm1162_vm14 = vcmp.ge.f32.partialorder %v1158_v37, 0.0  ;;  %vm1163_vm15 = vcmp.ge.f32.partialorder %v1159_v5, 0.0  ;;  %vm1164_vm0 = vcmp.ge.f32.partialorder %v1160_v25, 0.0  ;;  %vm1165_vm1 = vcmp.ge.f32.partialorder %v1161_v26, 0.0 }
 0x678   :  { %v1166_v21 = vmul.f32 0.01, %v1158_v37  ;;  %v1167_v39 = vmul.f32 0.01, %v1159_v5  ;;  %v1168_v49 = vmul.f32 0.01, %v1160_v25 }
 0x679   :  { %v1169_v28 = vmul.f32 0.01, %v1161_v26 }
 0x67a   :  { %v1170_v38 = vsel %vm1162_vm14, %v1158_v37, %v1166_v21  ;;  %v1171_v47 = vsel %vm1163_vm15, %v1159_v5, %v1167_v39  ;;  %v1172_v36 = vsel %vm1164_vm0, %v1160_v25, %v1168_v49 }
 0x67b   :  { %v1173_v50 = vsel %vm1165_vm1, %v1161_v26, %v1169_v28  ;;  %1174 = vst [vmem:[#allocation7] sm:$0xff] %v1170_v38  ;;  %1175 = vst [vmem:[#allocation7 + $0x8] sm:$0xff] %v1171_v47 }
 0x67c   :  { %1176 = vst [vmem:[#allocation7 + $0x10] sm:$0xff] %v1172_v36  ;;  %1177 = vst [vmem:[#allocation7 + $0x18] sm:$0xff] %v1173_v50 }
 0x67d   :  { %1356 = shalt.err (!%p1353_p0)
}
 0x67e   :  { %1187 = dma.vmem_to_hbm [thread:$0]  %s1185_s11, 512, %s2042_s12, [#allocation4]  }
 0x67f   :  { %1369 = dma.done.wait [#allocation4], 512  }
 0x680   :  { %1370 = vsyncadd [#allocation4], 4294966784 }
 0x681   :  { %1191 = vsyncpa [#allocation3], 1 }
 0x682   :  { %1192 = vsyncpa [#allocation6], 1 }
 0x683   :  { %1193 = vsyncpa [#allocation4], 1 }

</bundles_post_ra>
